<compile_context>
chip_gen: v7x
topology: tpu7x:2x2x1
jax: 0.10.0
libtpu: 0.0.40
codegen_flags: <defaults>
</compile_context>

<pallas_src>
import functools
import math

import jax
import jax.numpy as jnp
from jax.experimental import pallas as pl
from jax.experimental.pallas import tpu as pltpu

_MiB = 1024 * 1024


def _msa_kernel(x_ref, wqt_ref, bq_ref, wkvt_ref, bkv_ref, o_ref, kv_ref, *,
                n_heads: int, d_head: int, tq: int, num_q_tiles: int,
                mxu_dtype):
    """One grid step == (one batch element, one query tile).

    x_ref    : (1, S, D)   VMEM — full sequence of this batch element
                            (block index constant over qi -> fetched once per b)
    wqt_ref  : (D, D)      VMEM — block-diagonal, pre-transposed Q weights (bf16)
    bq_ref   : (1, D)      VMEM — Q bias (f32)
    wkvt_ref : (D, 2D)     VMEM — fused block-diagonal K|V weights (bf16)
    bkv_ref  : (1, 2D)     VMEM — fused K|V bias (f32)
    o_ref    : (1, tq, D)  VMEM — this query tile's output
    kv_ref   : (S, 2D)     VMEM scratch — K|V for the whole sequence, computed
                            once per batch element and carried across qi.
    """
    D = n_heads * d_head
    scale = 1.0 / math.sqrt(d_head)

    # ---- K/V for the full sequence: ONCE per batch element (qi == 0).  The qi
    # grid axis is "arbitrary", so this scratch persists across query tiles.
    @pl.when(pl.program_id(1) == 0)
    def _():
        xf = x_ref[0].astype(mxu_dtype)                           # (S, D)
        kv = jnp.dot(xf, wkvt_ref[...],
                     preferred_element_type=jnp.float32) + bkv_ref[...]
        kv_ref[...] = kv.astype(kv_ref.dtype)                     # (S, 2D)

    # ---- Q projection for this query tile only (scale folded into Q once).
    if num_q_tiles == 1:
        xq = x_ref[0]                                             # (S, D) == (tq, D)
    else:
        q_start = pl.multiple_of(pl.program_id(1) * tq, tq)
        xq = x_ref[0, pl.ds(q_start, tq), :]                      # (tq, D)
    q = (jnp.dot(xq.astype(mxu_dtype), wqt_ref[...],
                 preferred_element_type=jnp.float32) + bq_ref[...]) * scale
    qb = q.astype(mxu_dtype)                                      # (tq, D)

    kv = kv_ref[...]                                              # (S, 2D)

    # ---- Per-head attention.  n_heads is small & static -> Python unroll; only
    # the inherently d_head-wide attention math lives here.
    outs = []
    for h in range(n_heads):
        lo = h * d_head
        kh = kv[:, lo:lo + d_head]                                # (S, d_head)
        vh = kv[:, D + lo:D + lo + d_head]                        # (S, d_head)

        # scores = q_h @ k_h.T  (contraction over d_head, no transpose copy)
        s = jax.lax.dot_general(qb[:, lo:lo + d_head], kh,
                                (((1,), (1,)), ((), ())),
                                preferred_element_type=jnp.float32)   # (tq, S)

        # numerically stable softmax in f32; divide goes to the EUP slot
        m = jnp.max(s, axis=-1, keepdims=True)
        e = jnp.exp(s - m)
        denom = jnp.sum(e, axis=-1, keepdims=True)
        p = e * pl.reciprocal(denom, approx=True)

        outs.append(jnp.dot(p.astype(mxu_dtype), vh,
                            preferred_element_type=jnp.float32))  # (tq, d_head)

    # Single lane-dense (tq, D) store.
    o_ref[0] = jnp.concatenate(outs, axis=-1).astype(o_ref.dtype)


def _vmem_capacity_bytes() -> int:
    """Per-core VMEM capacity; conservative (v7x-sized) fallback if unknown."""
    try:
        return int(pltpu.get_tpu_info().vmem_capacity_bytes)
    except Exception:
        return 64 * _MiB


def _pick_tq(S: int, vmem_cap: int) -> int:
    """Query-tile size: big tiles on 128-MiB parts (v5e/v6e), 128 on v7x."""
    if S <= 128:
        return S
    prefs = (512, 256, 128, 64, 32, 16, 8) if vmem_cap >= 96 * _MiB \
        else (128, 64, 32, 16, 8)
    for t in prefs:
        if S % t == 0:
            return t
    # TODO(synk): mask/pad a ragged final query tile instead of degrading to tq=S.
    return S


def my_msa_pallas(x, wq, bq, wk, bk, wv, bv, *, n_heads: int,
                  mxu_dtype=jnp.bfloat16):
    """x: (B, S, D); w*: (n_heads, d_head, d_head) [out,in]; b*: (n_heads, d_head)."""
    B, S, D = x.shape
    assert D % n_heads == 0
    d_head = D // n_heads

    # ---- Layout plumbing in the wrapper (free): block-diagonal, transposed
    # weights so each projection is one lane-dense matmul with no in-kernel
    # transpose; K|V weights fused into (D, 2D); biases broadcast from (1, .).
    def blkdiag_t(w):
        out = jnp.zeros((D, D), dtype=jnp.float32)
        for h in range(n_heads):
            lo, hi = h * d_head, (h + 1) * d_head
            out = out.at[lo:hi, lo:hi].set(w[h].T.astype(jnp.float32))
        return out

    wqt = blkdiag_t(wq).astype(mxu_dtype)                           # (D, D)
    wkvt = jnp.concatenate([blkdiag_t(wk), blkdiag_t(wv)],
                           axis=1).astype(mxu_dtype)                # (D, 2D)
    bq2 = bq.reshape(1, D).astype(jnp.float32)
    bkv2 = jnp.concatenate([bk.reshape(1, D), bv.reshape(1, D)],
                           axis=1).astype(jnp.float32)              # (1, 2D)

    x_in = x.astype(mxu_dtype)                                      # bf16 in HBM

    vmem_cap = _vmem_capacity_bytes()
    vmem_limit = max(32 * _MiB, min((vmem_cap * 3) // 4, 100 * _MiB))
    tq = _pick_tq(S, vmem_cap)
    nq = S // tq

    kernel = functools.partial(_msa_kernel, n_heads=n_heads, d_head=d_head,
                               tq=tq, num_q_tiles=nq, mxu_dtype=mxu_dtype)

    def const_spec(shape):
        return pl.BlockSpec(shape, lambda b, qi: (0, 0))

    return pl.pallas_call(
        kernel,
        out_shape=jax.ShapeDtypeStruct((B, S, D), x.dtype),
        grid_spec=pltpu.PrefetchScalarGridSpec(
            num_scalar_prefetch=0,
            grid=(B, nq),
            in_specs=[
                # full sequence per batch element; block index constant over qi
                # -> fetched once per b, reused by every query tile
                pl.BlockSpec((1, S, D), lambda b, qi: (b, 0, 0)),
                const_spec((D, D)), const_spec((1, D)),          # Q weight/bias
                const_spec((D, 2 * D)), const_spec((1, 2 * D)),  # fused K|V
            ],
            out_specs=pl.BlockSpec((1, tq, D), lambda b, qi: (b, qi, 0)),
            scratch_shapes=[pltpu.VMEM((S, 2 * D), mxu_dtype)],  # K|V carry
        ),
        compiler_params=pltpu.CompilerParams(
            # b parallel (megacore shards batch), qi arbitrary (carries K/V scratch)
            dimension_semantics=("parallel", "arbitrary"),
            vmem_limit_bytes=vmem_limit),
    )(x_in, wqt, bq2, wkvt, bkv2)


def my_msa_reference(x, wq, bq, wk, bk, wv, bv, *, n_heads: int):
    """Pure-JAX f32 reference mirroring the PyTorch forward exactly."""
    B, S, D = x.shape
    d_head = D // n_heads
    outs = []
    for b in range(B):
        head_outs = []
        for h in range(n_heads):
            seq = x[b, :, h * d_head:(h + 1) * d_head]
            q = seq @ wq[h].T + bq[h]
            k = seq @ wk[h].T + bk[h]
            v = seq @ wv[h].T + bv[h]
            scores = (q @ k.T) / math.sqrt(d_head)
            attn = jax.nn.softmax(scores, axis=-1)
            head_outs.append(attn @ v)
        outs.append(jnp.concatenate(head_outs, axis=-1))
    return jnp.stack(outs, axis=0)


if __name__ == "__main__":
    # Small shapes consistent with MyMSA: batch=2, seq=8, d=32, n_heads=2 -> d_head=16
    B, S, D, n_heads = 2, 8, 32, 2
    d_head = D // n_heads

    key = jax.random.PRNGKey(0)
    kx, kwq, kbq, kwk, kbk, kwv, kbv = jax.random.split(key, 7)

    x = jax.random.normal(kx, (B, S, D), dtype=jnp.float32)

    # Deterministic parameter init (nn.Linear-style uniform(-1/sqrt(in), 1/sqrt(in)))
    bound = 1.0 / math.sqrt(d_head)
    init_w = lambda k: jax.random.uniform(k, (n_heads, d_head, d_head),
                                          minval=-bound, maxval=bound,
                                          dtype=jnp.float32)
    init_b = lambda k: jax.random.uniform(k, (n_heads, d_head),
                                          minval=-bound, maxval=bound,
                                          dtype=jnp.float32)
    wq, bq = init_w(kwq), init_b(kbq)
    wk, bk = init_w(kwk), init_b(kbk)
    wv, bv = init_w(kwv), init_b(kbv)

    out = my_msa_pallas(x, wq, bq, wk, bk, wv, bv, n_heads=n_heads)
    out = jax.block_until_ready(out)

    ref = my_msa_reference(x, wq, bq, wk, bk, wv, bv, n_heads=n_heads)
    assert out.shape == (B, S, D)
    # Tolerance accounts for bf16 MXU operands (f32 accumulation) and the EUP
    # approximate reciprocal in the softmax.
    assert jnp.allclose(out, ref, atol=5e-2, rtol=5e-2), \
        "Pallas output mismatch vs reference"

    print("KERNEL_OK")
</pallas_src>

<mosaic_0001>
module attributes {stable_mosaic.version = 11 : i64} {
  func.func @_msa_kernel(%arg0: i32, %arg1: i32, %arg2: memref<1x8x32xbf16, #tpu.memory_space<vmem>>, %arg3: memref<32x32xbf16, #tpu.memory_space<vmem>>, %arg4: memref<1x32xf32, #tpu.memory_space<vmem>>, %arg5: memref<32x64xbf16, #tpu.memory_space<vmem>>, %arg6: memref<1x64xf32, #tpu.memory_space<vmem>>, %arg7: memref<1x8x32xf32, #tpu.memory_space<vmem>>, %arg8: memref<8x64xbf16, #tpu.memory_space<vmem>>) attributes {dimension_semantics = [#tpu.dimension_semantics<parallel>, #tpu.dimension_semantics<arbitrary>], iteration_bounds = array<i64: 2, 1>, scalar_prefetch = 0 : i64, scratch_operands = 1 : i64, tpu.core_type = #tpu.core_type<tc>, window_params = [{transform_indices = @transform_0, window_bounds = array<i64: 1, 8, 32>}, {pipeline_mode = #tpu.pipeline_mode<synchronous>, transform_indices = @transform_1, window_bounds = array<i64: 32, 32>}, {pipeline_mode = #tpu.pipeline_mode<synchronous>, transform_indices = @transform_2, window_bounds = array<i64: 1, 32>}, {pipeline_mode = #tpu.pipeline_mode<synchronous>, transform_indices = @transform_3, window_bounds = array<i64: 32, 64>}, {pipeline_mode = #tpu.pipeline_mode<synchronous>, transform_indices = @transform_4, window_bounds = array<i64: 1, 64>}, {transform_indices = @transform_5, window_bounds = array<i64: 1, 8, 32>}]} {
    %c0_i32 = arith.constant 0 : i32
    %0 = arith.cmpi eq, %arg1, %c0_i32 : i32
    %1 = arith.extui %0 : i1 to i32
    %c0_i32_0 = arith.constant 0 : i32
    %2 = arith.cmpi ne, %1, %c0_i32_0 : i32
    scf.if %2 {
      %c0_21 = arith.constant 0 : index
      %c0_22 = arith.constant 0 : index
      %c0_23 = arith.constant 0 : index
      %50 = vector.load %arg2[%c0_21, %c0_22, %c0_23] : memref<1x8x32xbf16, #tpu.memory_space<vmem>>, vector<1x8x32xbf16>
      %51 = vector.shape_cast %50 : vector<1x8x32xbf16> to vector<8x32xbf16>
      %c0_24 = arith.constant 0 : index
      %c0_25 = arith.constant 0 : index
      %52 = vector.load %arg5[%c0_24, %c0_25] : memref<32x64xbf16, #tpu.memory_space<vmem>>, vector<32x64xbf16>
      %cst_26 = arith.constant dense<0.000000e+00> : vector<8x64xf32>
      %53 = tpu.matmul %51, %52, %cst_26 {dimension_numbers = #tpu.dot_dimension_numbers<[1], [0], [0], [1], [0, 0, 1, 1], [], []>} : vector<8x32xbf16>, vector<32x64xbf16>, vector<8x64xf32> -> vector<8x64xf32>
      %c0_27 = arith.constant 0 : index
      %c0_28 = arith.constant 0 : index
      %54 = vector.load %arg6[%c0_27, %c0_28] : memref<1x64xf32, #tpu.memory_space<vmem>>, vector<1x64xf32>
      %55 = vector.broadcast %54 : vector<1x64xf32> to vector<8x64xf32>
      %56 = arith.addf %53, %55 : vector<8x64xf32>
      %57 = arith.truncf %56 : vector<8x64xf32> to vector<8x64xbf16>
      %c0_29 = arith.constant 0 : index
      %c0_30 = arith.constant 0 : index
      %58 = vector.load %arg8[%c0_29, %c0_30] : memref<8x64xbf16, #tpu.memory_space<vmem>>, vector<8x64xbf16>
      tpu.vector_store %arg8[%c0_29, %c0_30], %57 {strides = array<i32>} : memref<8x64xbf16, #tpu.memory_space<vmem>>, vector<8x64xbf16>,
    } else {
    }
    %c0 = arith.constant 0 : index
    %c0_1 = arith.constant 0 : index
    %c0_2 = arith.constant 0 : index
    %3 = vector.load %arg2[%c0, %c0_1, %c0_2] : memref<1x8x32xbf16, #tpu.memory_space<vmem>>, vector<1x8x32xbf16>
    %4 = vector.shape_cast %3 : vector<1x8x32xbf16> to vector<8x32xbf16>
    %c0_3 = arith.constant 0 : index
    %c0_4 = arith.constant 0 : index
    %5 = vector.load %arg3[%c0_3, %c0_4] : memref<32x32xbf16, #tpu.memory_space<vmem>>, vector<32x32xbf16>
    %cst = arith.constant dense<0.000000e+00> : vector<8x32xf32>
    %6 = tpu.matmul %4, %5, %cst {dimension_numbers = #tpu.dot_dimension_numbers<[1], [0], [0], [1], [0, 0, 1, 1], [], []>} : vector<8x32xbf16>, vector<32x32xbf16>, vector<8x32xf32> -> vector<8x32xf32>
    %c0_5 = arith.constant 0 : index
    %c0_6 = arith.constant 0 : index
    %7 = vector.load %arg4[%c0_5, %c0_6] : memref<1x32xf32, #tpu.memory_space<vmem>>, vector<1x32xf32>
    %8 = vector.broadcast %7 : vector<1x32xf32> to vector<8x32xf32>
    %9 = arith.addf %6, %8 : vector<8x32xf32>
    %cst_7 = arith.constant 2.500000e-01 : f32
    %10 = vector.broadcast %cst_7 : f32 to vector<8x32xf32>
    %11 = arith.mulf %9, %10 : vector<8x32xf32>
    %12 = arith.truncf %11 : vector<8x32xf32> to vector<8x32xbf16>
    %c0_8 = arith.constant 0 : index
    %c0_9 = arith.constant 0 : index
    %13 = vector.load %arg8[%c0_8, %c0_9] : memref<8x64xbf16, #tpu.memory_space<vmem>>, vector<8x64xbf16>
    %14 = vector.extract_strided_slice %13 {offsets = [0, 0], sizes = [8, 16], strides = [1, 1]} : vector<8x64xbf16> to vector<8x16xbf16>
    %15 = vector.extract_strided_slice %13 {offsets = [0, 32], sizes = [8, 16], strides = [1, 1]} : vector<8x64xbf16> to vector<8x16xbf16>
    %16 = vector.extract_strided_slice %12 {offsets = [0, 0], sizes = [8, 16], strides = [1, 1]} : vector<8x32xbf16> to vector<8x16xbf16>
    %cst_10 = arith.constant dense<0.000000e+00> : vector<8x8xf32>
    %17 = tpu.matmul %16, %14, %cst_10 {dimension_numbers = #tpu.dot_dimension_numbers<[1], [1], [0], [0], [0, 0, 1, 0], [], []>} : vector<8x16xbf16>, vector<8x16xbf16>, vector<8x8xf32> -> vector<8x8xf32>
    %cst_11 = arith.constant dense<0xFF800000> : vector<8xf32>
    %18 = vector.multi_reduction <maximumf>, %17, %cst_11 [1] : vector<8x8xf32> to vector<8xf32>
    %19 = vector.shape_cast %18 : vector<8xf32> to vector<8x1xf32>
    %20 = vector.broadcast %19 : vector<8x1xf32> to vector<8x8xf32>
    %21 = arith.subf %17, %20 : vector<8x8xf32>
    %22 = math.exp %21 : vector<8x8xf32>
    %cst_12 = arith.constant dense<0.000000e+00> : vector<8xf32>
    %23 = vector.multi_reduction <add>, %22, %cst_12 [1] : vector<8x8xf32> to vector<8xf32>
    %24 = vector.shape_cast %23 : vector<8xf32> to vector<8x1xf32>
    %25 = tpu.reciprocal %24 {approx = true} : vector<8x1xf32> -> vector<8x1xf32>
    %26 = vector.broadcast %25 : vector<8x1xf32> to vector<8x8xf32>
    %27 = arith.mulf %22, %26 : vector<8x8xf32>
    %28 = arith.truncf %27 : vector<8x8xf32> to vector<8x8xbf16>
    %cst_13 = arith.constant dense<0.000000e+00> : vector<8x16xf32>
    %29 = tpu.matmul %28, %15, %cst_13 {dimension_numbers = #tpu.dot_dimension_numbers<[1], [0], [0], [1], [0, 0, 1, 1], [], []>} : vector<8x8xbf16>, vector<8x16xbf16>, vector<8x16xf32> -> vector<8x16xf32>
    %30 = vector.extract_strided_slice %13 {offsets = [0, 16], sizes = [8, 16], strides = [1, 1]} : vector<8x64xbf16> to vector<8x16xbf16>
    %31 = vector.extract_strided_slice %13 {offsets = [0, 48], sizes = [8, 16], strides = [1, 1]} : vector<8x64xbf16> to vector<8x16xbf16>
    %32 = vector.extract_strided_slice %12 {offsets = [0, 16], sizes = [8, 16], strides = [1, 1]} : vector<8x32xbf16> to vector<8x16xbf16>
    %cst_14 = arith.constant dense<0.000000e+00> : vector<8x8xf32>
    %33 = tpu.matmul %32, %30, %cst_14 {dimension_numbers = #tpu.dot_dimension_numbers<[1], [1], [0], [0], [0, 0, 1, 0], [], []>} : vector<8x16xbf16>, vector<8x16xbf16>, vector<8x8xf32> -> vector<8x8xf32>
    %cst_15 = arith.constant dense<0xFF800000> : vector<8xf32>
    %34 = vector.multi_reduction <maximumf>, %33, %cst_15 [1] : vector<8x8xf32> to vector<8xf32>
    %35 = vector.shape_cast %34 : vector<8xf32> to vector<8x1xf32>
    %36 = vector.broadcast %35 : vector<8x1xf32> to vector<8x8xf32>
    %37 = arith.subf %33, %36 : vector<8x8xf32>
    %38 = math.exp %37 : vector<8x8xf32>
    %cst_16 = arith.constant dense<0.000000e+00> : vector<8xf32>
    %39 = vector.multi_reduction <add>, %38, %cst_16 [1] : vector<8x8xf32> to vector<8xf32>
    %40 = vector.shape_cast %39 : vector<8xf32> to vector<8x1xf32>
    %41 = tpu.reciprocal %40 {approx = true} : vector<8x1xf32> -> vector<8x1xf32>
    %42 = vector.broadcast %41 : vector<8x1xf32> to vector<8x8xf32>
    %43 = arith.mulf %38, %42 : vector<8x8xf32>
    %44 = arith.truncf %43 : vector<8x8xf32> to vector<8x8xbf16>
    %cst_17 = arith.constant dense<0.000000e+00> : vector<8x16xf32>
    %45 = tpu.matmul %44, %31, %cst_17 {dimension_numbers = #tpu.dot_dimension_numbers<[1], [0], [0], [1], [0, 0, 1, 1], [], []>} : vector<8x8xbf16>, vector<8x16xbf16>, vector<8x16xf32> -> vector<8x16xf32>
    %46 = tpu.concatenate %29, %45 in 1 : vector<8x16xf32>, vector<8x16xf32> -> vector<8x32xf32>
    %c0_18 = arith.constant 0 : index
    %c0_19 = arith.constant 0 : index
    %c0_20 = arith.constant 0 : index
    %47 = vector.load %arg7[%c0_18, %c0_19, %c0_20] : memref<1x8x32xf32, #tpu.memory_space<vmem>>, vector<1x8x32xf32>
    %48 = vector.shape_cast %47 : vector<1x8x32xf32> to vector<8x32xf32>
    %49 = vector.shape_cast %46 : vector<8x32xf32> to vector<1x8x32xf32>
    tpu.vector_store %arg7[%c0_18, %c0_19, %c0_20], %49 {strides = array<i32>} : memref<1x8x32xf32, #tpu.memory_space<vmem>>, vector<1x8x32xf32>,
    return
  }
  func.func @transform_0(%arg0: i32, %arg1: i32) -> (i32, i32, i32) {
    %c0_i32 = arith.constant 0 : i32
    %c0_i32_0 = arith.constant 0 : i32
    %c0_i32_1 = arith.constant 0 : i32
    return %arg0, %c0_i32, %c0_i32_0 : i32, i32, i32
  }
  func.func @transform_1(%arg0: i32, %arg1: i32) -> (i32, i32) {
    %c0_i32 = arith.constant 0 : i32
    %c0_i32_0 = arith.constant 0 : i32
    %c0_i32_1 = arith.constant 0 : i32
    return %c0_i32, %c0_i32_0 : i32, i32
  }
  func.func @transform_2(%arg0: i32, %arg1: i32) -> (i32, i32) {
    %c0_i32 = arith.constant 0 : i32
    %c0_i32_0 = arith.constant 0 : i32
    %c0_i32_1 = arith.constant 0 : i32
    return %c0_i32, %c0_i32_0 : i32, i32
  }
  func.func @transform_3(%arg0: i32, %arg1: i32) -> (i32, i32) {
    %c0_i32 = arith.constant 0 : i32
    %c0_i32_0 = arith.constant 0 : i32
    %c0_i32_1 = arith.constant 0 : i32
    return %c0_i32, %c0_i32_0 : i32, i32
  }
  func.func @transform_4(%arg0: i32, %arg1: i32) -> (i32, i32) {
    %c0_i32 = arith.constant 0 : i32
    %c0_i32_0 = arith.constant 0 : i32
    %c0_i32_1 = arith.constant 0 : i32
    return %c0_i32, %c0_i32_0 : i32, i32
  }
  func.func @transform_5(%arg0: i32, %arg1: i32) -> (i32, i32, i32) {
    %c0_i32 = arith.constant 0 : i32
    %c0_i32_0 = arith.constant 0 : i32
    return %arg0, %arg1, %c0_i32 : i32, i32, i32
  }
}

</mosaic_0001>

<bundles_post_ra>
// kernel: tpu_custom_call.1
= control target key start
LH: loop header
LB: loop body
LE: loop exit
PB: predicated region body
PF: predicated region fallthrough
CT: control target
= control target key end

     0   :  { %10 = vsyncpa [#allocation4], 0  ;;  %s1469_s0 = inlined_call_operand.hbm [shape: bf16[2,8,32], index: 0, kind: input, shape index: {}]   ;;  %s1470_s1 = inlined_call_operand.hbm [shape: bf16[32,32], index: 1, kind: input, shape index: {}]   ;;  %s1471_s2 = inlined_call_operand.vmem [shape: f32[1,32], index: 2, kind: input, shape index: {}]   ;;  %s1472_s3 = inlined_call_operand.hbm [shape: bf16[32,64], index: 3, kind: input, shape index: {}]   ;;  %s1473_s4 = inlined_call_operand.vmem [shape: f32[1,64], index: 4, kind: input, shape index: {}]   ;;  %s1474_s5 = inlined_call_operand.hbm [shape: f32[2,8,32], index: 5, kind: output, shape index: {}]  }
   0x1   :  { %12 = vsyncpa [#allocation4 + $0x1], 0 }
   0x2   :  { %13 = vsyncpa [#allocation7], 0 }
   0x3   :  { %14 = vsyncpa [#allocation5], 0 }
   0x4   :  { %16 = vsyncpa [#allocation5 + $0x1], 0  ;;  %s1176_s18 = smov 0   ;;  %s1178_s19 = smov 0  }
   0x5   :  { %s1180_s20 = smov 0   ;;  %s1182_s21 = smov 0  }
   0x6   :  { %s1184_s22 = smov 0   ;;  %s1186_s23 = smov 0  }
   0x7 LB: > { %s772_s24 = sadd.s32 4294967295, %s1132_s23   ;;  %s773_s25 = sadd.s32 4294967294, %s1132_s23   ;;  %s1132_s23 = sphi %s1186_s23, %s22_s23   ;;  %s1128_s22 = sphi %s1184_s22, %s1496_s22   ;;  %s1124_s21 = sphi %s1182_s21, %s1495_s21   ;;  %s1120_s20 = sphi %s1180_s20, %s1494_s20   ;;  %s1116_s19 = sphi %s1178_s19, %s1493_s19   ;;  %s1112_s18 = sphi %s1176_s18, %s1492_s18  }
   0x8   : > { %p54_p0 = scmp.ne.s32.totalorder %s1116_s19, %s1112_s18  ;;  %p1210_p1 = scmp.eq.s32.totalorder %s772_s24, 0 }
   0x9   : > { %p1214_p2 = scmp.eq.s32.totalorder %s772_s24, 1  ;;  %p170_p3 = scmp.eq.s32.totalorder %s773_s25, 1 }
   0xa   : > { %s1479_s26 = scalar_select %p1210_p1, 1, 0 }
   0xb   : > { %p1220_p4 = por %p1210_p1, %p54_p0  ;;  %p774_p5 = scmp.ge.s32.totalorder %s1132_s23, 1 }
   0xc   : > { %p1225_p6 = por %p170_p3, %p54_p0  ;;  %p177_p7 = scmp.lt.s32.totalorder %s1132_s23, 3 }
   0xd   : > { %s1481_s28 = scalar_select %p1220_p4, 1, 0 }
   0xe   : > { %s1482_s29 = scalar_select %p1225_p6, 1, 0 }
   0xf   : > { %p1230_p8 = pnand %p774_p5, %p177_p7  ;;  %s1134_s6 = smov [#allocation6]  }
  0x10   : > { %s189_s7 = sshll.u32 %s1134_s6, 4  ;;  %s1135_s9 = smov [#allocation8]   ;;  %s1234_s7 = int_to_ptr.vmem [resolvable:$true] %s189_s7 }
  0x11   : > { %p868_p9 = pneg %p1230_p8  ;;  %s205_s10 = sshll.u32 %s1135_s9, 4  ;;  %s1245_s10 = int_to_ptr.vmem [resolvable:$true] %s205_s10 }
  0x12   : > { %s960_s13 = scalar_lea.hbm %s1470_s1, 256 }
  0x13   : > { %p1241_p11 = pnand %p868_p9, %p1210_p1  ;;  %p961_p12 = scmp.ne.s32.totalorder %s1470_s1, %s960_s13 }
  0x14   : > { %p967_p5 = scmp.lt.u32.totalorder %s960_s13, %s1470_s1 }
  0x15   : > { %p962_p13 = pneg %p1241_p11 }
  0x17   : > { %p963_p0 = pnand %p962_p13, %p961_p12 }
  0x19   : > { %p964_p3 = pneg %p963_p0 }
  0x1b   : > { %p969_p7 = pnand %p967_p5, %p964_p3 }
  0x1d   : > { %972 = shalt.err (!%p969_p7)
}
  0x1e   : > { %s973_s24 = scalar_lea.vmem %s1234_s7, 256  ;;  %p981_p1 = scmp.lt.s32.totalorder %s1234_s7, %s1234_s7 }
  0x1f   : > { %p974_p9 = scmp.ne.s32.totalorder %s1234_s7, %s973_s24  ;;  %p982_p12 = scmp.lt.s32.totalorder %s973_s24, %s973_s24 }
  0x21   : > { %p976_p10 = pnand %p974_p9, %p962_p13  ;;  %p983_p0 = por %p982_p12, %p981_p1 }
  0x23   : > { %p977_p6 = pneg %p976_p10 }
  0x25   : > { %p984_p4 = pnand %p983_p0, %p977_p6 }
  0x27   : > { %987 = shalt.err (!%p984_p4)
}
  0x28   : > { %s1136_s25 = smov 64   ;;  %s1137_s6 = smov 4  }
  0x29   : > { %871 = dma.hbm_to_vmem [thread:$0]  (!%p1241_p11), %s1470_s1, 256, %s1234_s7, [#allocation7], %s1136_s25, %s1136_s25, %s1137_s6  }
  0x2a   : > { %s988_s14 = scalar_lea.hbm %s1472_s3, 256 }
  0x2b   : > { %p989_p1 = scmp.ne.s32.totalorder %s1472_s3, %s988_s14  ;;  %p995_p10 = scmp.lt.u32.totalorder %s988_s14, %s1472_s3 }
  0x2d   : > { %p991_p4 = pnand %p989_p1, %p962_p13 }
  0x2f   : > { %p992_p6 = pneg %p991_p4 }
  0x31   : > { %p997_p3 = pnand %p995_p10, %p992_p6 }
  0x33   : > { %1000 = shalt.err (!%p997_p3)
}
  0x34   : > { %s1001_s7 = scalar_lea.vmem %s1245_s10, 256  ;;  %p1009_p12 = scmp.lt.s32.totalorder %s1245_s10, %s1245_s10 }
  0x35   : > { %p1002_p5 = scmp.ne.s32.totalorder %s1245_s10, %s1001_s7  ;;  %p1010_p0 = scmp.lt.s32.totalorder %s1001_s7, %s1001_s7 }
  0x37   : > { %p1004_p7 = pnand %p1002_p5, %p962_p13  ;;  %p1011_p1 = por %p1010_p0, %p1009_p12 }
  0x39   : > { %p1005_p9 = pneg %p1004_p7 }
  0x3b   : > { %p1012_p4 = pnand %p1011_p1, %p1005_p9 }
  0x3d   : > { %1015 = shalt.err (!%p1012_p4)
}
  0x3e   : > { %874 = dma.hbm_to_vmem [thread:$0]  (!%p1241_p11), %s1472_s3, 256, %s1245_s10, [#allocation7], %s1136_s25, %s1136_s25, %s1137_s6  }
  0x3f   : > { %s34_s12 = sadd.s32 1, %s1128_s22  ;;  %s41_s13 = sadd.s32 1, %s1120_s20 }
  0x40   : > { %p36_p13 = scmp.ge.s32.totalorder %s34_s12, 2  ;;  %p48_p6 = scmp.ne.s32.totalorder %s1120_s20, %s1116_s19 }
  0x41   : > { %p49_p10 = scmp.eq.s32.totalorder %s1132_s23, 0  ;;  %p885_p3 = scmp.lt.s32.totalorder %s1132_s23, 2 }
  0x42   : > { %s1498_s12 = smov (%p36_p13, %s34_s12), 0  ;;  %p1309_p7 = por %p1214_p2, %p48_p6 }
  0x43   : > { %p50_p5 = por %p49_p10, %p48_p6  ;;  %s38_s14 = ssub.s32 %s1128_s22, %s1498_s12 }
  0x44   : > { %s1485_s8 = scalar_select %p1309_p7, 1, 0 }
  0x45   : > { %s222_s15 = sand.u32 1, %s1120_s20   ;;  %p39_p9 = scmp.eq.s32.totalorder %s38_s14, 0 }
  0x46   : > { %s778_s10 = sshll.u32 %s222_s15, 2  ;;  %s779_s25 = sshll.u32 %s1128_s22, 6 }
  0x47   : > { %s1318_s6 = scalar_select %p39_p9, %s1120_s20, %s41_s13  }
  0x48   : > { %s1323_s24 = scalar_lea.hbm %s1469_s0, %s779_s25  ;;  %s226_s27 = scalar_lea.vmem [#allocation3], %s778_s10 }
  0x49   : > { %s233_s7 = sshll.u32 %s226_s27, 4  ;;  %p1327_p2 = pnand %p885_p3, %p50_p5  ;;  %s1331_s7 = int_to_ptr.vmem [resolvable:$true] %s233_s7 }
  0x4a   : > { %s223_s11 = scalar_lea.sflag [#allocation4], %s222_s15  ;;  %s1016_s13 = scalar_lea.hbm %s1323_s24, 64 }
  0x4b   : > { %p1017_p11 = scmp.ne.s32.totalorder %s1323_s24, %s1016_s13  ;;  %p1018_p12 = pneg %p1327_p2 }
  0x4c   : > { %s1021_s25 = scalar_lea.hbm %s1469_s0, 128  ;;  %p1022_p4 = scmp.lt.u32.totalorder %s1323_s24, %s1469_s0 }
  0x4d   : > { %p1019_p0 = pnand %p1018_p12, %p1017_p11  ;;  %p1023_p13 = scmp.lt.u32.totalorder %s1021_s25, %s1016_s13 }
  0x4e   : > { %p1025_p10 = scmp.lt.u32.totalorder %s1016_s13, %s1323_s24 }
  0x4f   : > { %p1020_p1 = pneg %p1019_p0  ;;  %p1024_p6 = por %p1023_p13, %p1022_p4 }
  0x51   : > { %p1026_p3 = por %p1025_p10, %p1024_p6 }
  0x53   : > { %p1027_p5 = pnand %p1026_p3, %p1020_p1 }
  0x55   : > { %1030 = shalt.err (!%p1027_p5)
}
  0x56   : > { %s1031_s15 = scalar_lea.vmem %s1331_s7, 64  ;;  %s1138_s27 = smov [#allocation3]  }
  0x57   : > { %p1032_p9 = scmp.ne.s32.totalorder %s1331_s7, %s1031_s15  ;;  %s1036_s14 = sshll.u32 %s1138_s27, 4  ;;  %s1037_s14 = int_to_ptr.vmem [resolvable:$false] %s1036_s14 }
  0x58   : > { %s1038_s10 = scalar_lea.vmem %s1037_s14, 128  ;;  %p1039_p7 = scmp.lt.s32.totalorder %s1331_s7, %s1037_s14 }
  0x59   : > { %p1034_p11 = pnand %p1032_p9, %p1018_p12  ;;  %p1040_p4 = scmp.lt.s32.totalorder %s1038_s10, %s1031_s15 }
  0x5b   : > { %p1035_p0 = pneg %p1034_p11  ;;  %p1041_p13 = por %p1040_p4, %p1039_p7 }
  0x5d   : > { %p1042_p6 = pnand %p1041_p13, %p1035_p0 }
  0x5f   : > { %1045 = shalt.err (!%p1042_p6)
}
  0x60   : > { %878 = dma.hbm_to_vmem [thread:$0]  (!%p1327_p2), %s1323_s24, 64, %s1331_s7, %s223_s11  }
  0x61   : > { %242 = sbr.rel (%p1230_p8) target bundleno = 1337 (0x539), region = 40  ;;  %s1361_s13 = sand.u32 (!%p1230_p8), 1, %s1116_s19  }
  0x62   : > { %s781_s25 = sshll.u32 (!%p1230_p8), %s1361_s13, 2  ;;  %s245_s16 = scalar_lea.sflag (!%p1230_p8), [#allocation4], %s1361_s13 }
  0x63   : > { %s248_s17 = scalar_lea.vmem (!%p1230_p8), [#allocation3], %s781_s25  ;;  %p1487_p7 = scmp.ne.s32.totalorder (!%p1230_p8), %s1481_s28, 0 }
  0x68   : > { %1099 = dma.done.wait (%p1487_p7), %s245_s16, 64  }
  0x69   : > { %1101 = vsyncadd (%p1487_p7), %s245_s16, 4294967232  ;;  %p1488_p12 = scmp.ne.s32.totalorder %s1479_s26, 0 }
  0x6b   : > { %1103 = dma.done.wait (%p1488_p12), [#allocation7], 512  }
  0x6c   : > { %1105 = vsyncadd (%p1488_p12), [#allocation7], 4294966784  ;;  %v1139_v0 = vmov 0.0   ;;  %vm1140_vm0 = vmmov 0   ;;  %v947_v1 = vld [vmem:[#allocation8] sm:$0xff]   ;;  %v948_v2 = vld [vmem:[#allocation8 + $0x8] sm:$0xff]  }
  0x6d   : > { %816 = vmatprep.subr.bf16.mxu0 %v1139_v0  ;;  %820 = vmatprep.mubr.msk.bf16.mxu0 %vm1140_vm0, %v1139_v0  ;;  %v949_v3 = vld [vmem:[#allocation6] sm:$0xff]   ;;  %v950_v4 = vld [vmem:[#allocation6 + $0x8] sm:$0xff]   ;;  %v288_v5 = vld [vmem:[%s248_s17] sm:$0xf]  ;;  %vm312_vm1 = vcmask 261120   ;;  %vm357_vm2 = vcmask 519168  }
  0x6e   : > { %824 = vmatprep.subr.bf16.mxu1 %v1139_v0  ;;  %828 = vmatprep.mubr.msk.bf16.mxu1 %vm1140_vm0, %v1139_v0  ;;  %v359_v6 = vld [vmem:[%s248_s17] sm:$0xf]  ;;  %v785_v7 = vld [vmem:[%s1473_s4] ss:$0 sm:$0xff]  ;;  %vm430_vm3 = vcmask 130048   ;;  %s1141_s7 = smov 112  }
  0x6f   : > { %817 = vmatpush3.bf16.msra.mxu0 %v947_v1  ;;  %825 = vmatpush3.bf16.msra.mxu1 %v949_v3  ;;  %v789_v17 = vld [vmem:[%s1471_s2] ss:$0 sm:$0xff]  ;;  %vm477_vm4 = vcmask 64512   ;;  %s1142_s9 = smov 96   ;;  %vm498_vm5 = vcmask 1043456   ;;  %s1143_s11 = smov 80  }
  0x70   : > { %818 = vmatprep.subr.bf16.mxu0 %v1139_v0  ;;  %826 = vmatprep.subr.bf16.mxu1 %v1139_v0  ;;  %s1144_s15 = smov 16   ;;  %s784_s27 = sshll.u32 %s1361_s13, 3 }
  0x71   : > { %s799_s14 = sshll.u32 %s1124_s21, 7  ;;  %s282_s10 = scalar_lea.vmem [#allocation9], %s784_s27 }
  0x72   : > { %s674_s25 = sshll.u32 %s282_s10, 4  ;;  %s1418_s26 = scalar_lea.hbm %s1474_s5, %s799_s14  ;;  %s1420_s25 = int_to_ptr.vmem [resolvable:$true] %s674_s25 }
  0x73   : > { %819 = vmatpush3.bf16.msra.mxu0 %v948_v2  ;;  %827 = vmatpush3.bf16.msra.mxu1 %v950_v4  ;;  %s660_s28 = scalar_lea.sflag [#allocation5], %s1361_s13  ;;  %s1046_s30 = scalar_lea.vmem %s1420_s25, 128 }
  0x74   : > { %832 = vmatprep.subr.bf16.mxu0 %v1139_v0  ;;  %838 = vmatprep.subr.bf16.mxu1 %v1139_v0  ;;  %p1047_p8 = scmp.ne.s32.totalorder %s1420_s25, %s1046_s30  ;;  %p1489_p2 = scmp.ne.s32.totalorder %s1485_s8, 0 }
  0x75   : > { %s1145_s21 = smov [#allocation9]  }
  0x76   : > { %821 = vmatmul.mubr.msk.bf16.vlgmr.msra.gmra.mrb[0].mxu0 %vm312_vm1, %v288_v5  ;;  %829 = vmatmul.mubr.msk.bf16.vlgmr.msra.gmra.mrb[0].mxu1 %vm312_vm1, %v359_v6  ;;  %p1048_p1 = pnand %p1047_p8, %p1489_p2  ;;  %s1050_s24 = sshll.u32 %s1145_s21, 4  ;;  %s1051_s24 = int_to_ptr.vmem [resolvable:$false] %s1050_s24 }
  0x77   : > { %834 = vmatprep.mubr.msk.bf16.mxu0 %vm1140_vm0, %v1139_v0  ;;  %840 = vmatprep.mubr.msk.bf16.mxu1 %vm1140_vm0, %v1139_v0  ;;  %p1053_p3 = scmp.lt.s32.totalorder %s1420_s25, %s1051_s24 }
  0x78   : > { %p1049_p10 = pneg %p1048_p1 }
 0x149   : > { %v350_v8 = vpop.f32.mrb[0].mxu0  ;;  %v421_v14 = vpop.f32.mrb[0].mxu1 }
 0x14a   : > { %v351_v9 = vadd.f32 %v785_v7, %v350_v8  ;;  %v822_v10 = vpop.f32.mrb[1].mxu0  ;;  %v830_v15 = vpop.f32.mrb[1].mxu1  ;;  %v422_v19 = vadd.f32 %v789_v17, %v421_v14 }
 0x14b   : > { %v353_v11 = vpop.f32.mrb[2].mxu0  ;;  %v424_v16 = vpop.f32.mrb[2].mxu1 }
 0x14c   : > { %v356_v12 = vpack.c.bf16 %v351_v9, %v351_v9  ;;  %v823_v13 = vpop.f32.mrb[3].mxu0  ;;  %v831_v18 = vpop.f32.mrb[3].mxu1  ;;  %v427_v21 = vmul.f32 0.25, %v422_v19 }
 0x14e   : > { %358 = vst.msk [vmem:[#allocation2] sm:$0xf] %vm357_vm2, %v356_v12  ;;  %v428_v24 = vpack.c.bf16 %v427_v21, %v427_v21 }
 0x155   : > { %v429_v20 = vld [vmem:[#allocation2] sm:$0xf] }
 0x156   : > { %v435_v22 = vsel %vm430_vm3, %v429_v20, 0  ;;  %v794_v23 = vcombine.low %v429_v20, %v429_v20 }
 0x157   : > { %833 = vmatpush3.bf16.xpose.msra.mxu0 %v435_v22 }
 0x158   : > { %545 = vrot.lane.b32.xlu0 %v794_v23, %s1141_s7  ;;  %844 = vmatprep.subr.bf16.mxu0 %v1139_v0 }
 0x15c   : > { %543 = vrot.lane.b32.xlu0 %v428_v24, %s1141_s7  ;;  %s1052_s7 = scalar_lea.vmem %s1051_s24, 256 }
 0x15d   : > { %p1054_p5 = scmp.lt.s32.totalorder %s1052_s7, %s1046_s30 }
 0x15e   : > { %835 = vmatmul.mubr.msk.bf16.vlgmr.msra.gmra.mrb[4].mxu0 %vm430_vm3, %v428_v24 }
 0x15f   : > { %846 = vmatprep.mubr.msk.bf16.mxu0 %vm1140_vm0, %v1139_v0  ;;  %p1055_p9 = por %p1054_p5, %p1053_p3 }
 0x161   : > { %p1056_p11 = pnand %p1055_p9, %p1049_p10 }
 0x1ca   : > { %v546_v25 = vpop.permute.xlu0 %545 }
 0x1cb   : > { %v551_v26 = vsel %vm430_vm3, %v546_v25, 0 }
 0x1cc   : > { %845 = vmatpush3.bf16.xpose.msra.mxu0 %v551_v26 }
 0x1ce   : > { %v544_v27 = vpop.permute.xlu0 %543 }
 0x1d3   : > { %847 = vmatmul.mubr.msk.bf16.vlgmr.msra.gmra.mrb[8].mxu0 %vm430_vm3, %v544_v27 }
 0x231   : > { %v471_v28 = vpop.f32.mrb[4].mxu0 }
 0x232   : > { %v836_v29 = vpop.f32.mrb[5].mxu0  ;;  %v478_v30 = vsel %vm477_vm4, %v471_v28, -inf }
 0x233   : > { %479 = vmax.xlane.f32.xlu1 %v478_v30  ;;  %v474_v31 = vpop.f32.mrb[6].mxu0 }
 0x234   : > { %v837_v32 = vpop.f32.mrb[7].mxu0 }
 0x2a6   : > { %v587_v33 = vpop.f32.mrb[8].mxu0 }
 0x2a7   : > { %v848_v34 = vpop.f32.mrb[9].mxu0  ;;  %v593_v35 = vsel %vm477_vm4, %v587_v33, -inf }
 0x2a8   : > { %594 = vmax.xlane.f32.xlu1 %v593_v35  ;;  %v590_v36 = vpop.f32.mrb[10].mxu0 }
 0x2a9   : > { %v849_v37 = vpop.f32.mrb[11].mxu0 }
 0x2b9   : > { %493 = vrot.lane.b32.xlu1 %v794_v23, %s1142_s9 }
 0x2c0   : > { %v480_v38 = vpop.xlane.xlu1 %479 }
 0x2c1   : > { %v481_v39 = vsub.f32 %v471_v28, %v480_v38 }
 0x2c3   : > { %v482_v40 = vmul.f32 1.442695, %v481_v39 }
 0x2c5   : > { %952 = vpow2.f32 %v482_v40 }
 0x2cf   : > { %v953_v41 = vpop.eup %952 }
 0x2d0   : > { %v484_v42 = vsel %vm477_vm4, %v953_v41, 0.0 }
 0x2d1   : > { %485 = vadd.xlane.f32.xlu0 %v484_v42 }
 0x335   : > { %v595_v43 = vpop.xlane.xlu1 %594 }
 0x336   : > { %v596_v44 = vsub.f32 %v587_v33, %v595_v43 }
 0x338   : > { %v597_v45 = vmul.f32 1.442695, %v596_v44 }
 0x339   : > { %v494_v46 = vpop.permute.xlu1 %493 }
 0x33a   : > { %954 = vpow2.f32 %v597_v45  ;;  %v500_v47 = vsel %vm498_vm5, %v494_v46, 0 }
 0x33b   : > { %839 = vmatpush3.bf16.msra.mxu1 %v500_v47 }
 0x33c   : > { %850 = vmatprep.subr.bf16.mxu1 %v1139_v0 }
 0x344   : > { %v955_v48 = vpop.eup %954 }
 0x345   : > { %v599_v49 = vsel %vm477_vm4, %v955_v48, 0.0 }
 0x346   : > { %600 = vadd.xlane.f32.xlu1 %v599_v49 }
 0x357   : > { %605 = vrot.lane.b32.xlu1 %v794_v23, %s1143_s11 }
 0x35e   : > { %v486_v50 = vpop.xlane.xlu0 %485 }
 0x35f   : > { %956 = vrcp.f32 %v486_v50 }
 0x369   : > { %v957_v51 = vpop.eup %956 }
 0x36a   : > { %v488_v52 = vmul.f32 %v957_v51, %v953_v41 }
 0x36c   : > { %v489_v53 = vpack.c.bf16 %v488_v52, %v488_v52 }
 0x36e   : > { %841 = vmatmul.mubr.msk.bf16.vlgmr.msra.gmra.mrb[4].mxu1 %vm477_vm4, %v489_v53 }
 0x36f   : > { %852 = vmatprep.mubr.msk.bf16.mxu1 %vm1140_vm0, %v1139_v0 }
 0x3d3   : > { %v601_v54 = vpop.xlane.xlu1 %600 }
 0x3d4   : > { %958 = vrcp.f32 %v601_v54 }
 0x3d7   : > { %v606_v55 = vpop.permute.xlu1 %605 }
 0x3d8   : > { %v611_v56 = vsel %vm498_vm5, %v606_v55, 0 }
 0x3d9   : > { %851 = vmatpush3.bf16.msra.mxu1 %v611_v56 }
 0x3de   : > { %v959_v57 = vpop.eup %958 }
 0x3df   : > { %v603_v58 = vmul.f32 %v959_v57, %v955_v48 }
 0x3e1   : > { %v604_v59 = vpack.c.bf16 %v603_v58, %v603_v58 }
 0x3e3   : > { %853 = vmatmul.mubr.msk.bf16.vlgmr.msra.gmra.mrb[8].mxu1 %vm477_vm4, %v604_v59 }
 0x441   : > { %v536_v60 = vpop.f32.mrb[4].mxu1 }
 0x442   : > { %v842_v61 = vpop.f32.mrb[5].mxu1 }
 0x443   : > { %v539_v62 = vpop.f32.mrb[6].mxu1 }
 0x444   : > { %v843_v63 = vpop.f32.mrb[7].mxu1 }
 0x4b6   : > { %v647_v1 = vpop.f32.mrb[8].mxu1 }
 0x4b7   : > { %654 = vrot.lane.b32.xlu1 %v647_v1, %s1144_s15  ;;  %v854_v0 = vpop.f32.mrb[9].mxu1 }
 0x4b8   : > { %v650_v2 = vpop.f32.mrb[10].mxu1 }
 0x4b9   : > { %v855_v3 = vpop.f32.mrb[11].mxu1 }
 0x529   : > { %v655_v4 = vpop.permute.xlu1 %654 }
 0x52a   : > { %v657_v5 = vsel %vm430_vm3, %v536_v60, %v655_v4 }
 0x52b   : > { %658 = vst.msk [vmem:[%s282_s10] sm:$0xff] %vm312_vm1, %v657_v5 }
 0x52c   : > { %1059 = shalt.err (!%p1056_p11)
}
 0x52d   : > { %s1060_s13 = scalar_lea.hbm %s1418_s26, 128  ;;  %s1064_s15 = scalar_lea.hbm %s1474_s5, 256 }
 0x52e   : > { %p1061_p0 = scmp.ne.s32.totalorder %s1418_s26, %s1060_s13  ;;  %p1065_p6 = scmp.lt.u32.totalorder %s1418_s26, %s1474_s5 }
 0x52f   : > { %p1066_p7 = scmp.lt.u32.totalorder %s1064_s15, %s1060_s13  ;;  %p1068_p8 = scmp.lt.u32.totalorder %s1060_s13, %s1418_s26 }
 0x530   : > { %p1062_p4 = pnand %p1061_p0, %p1489_p2 }
 0x531   : > { %p1067_p12 = por %p1066_p7, %p1065_p6 }
 0x532   : > { %p1063_p13 = pneg %p1062_p4 }
 0x533   : > { %p1069_p1 = por %p1068_p8, %p1067_p12 }
 0x535   : > { %p1070_p10 = pnand %p1069_p1, %p1063_p13 }
 0x537   : > { %1073 = shalt.err (!%p1070_p10)
}
 0x538   : > { %866 = dma.vmem_to_hbm [thread:$0]  (%p1489_p2), %s1420_s25, 128, %s1418_s26, %s660_s28  }
 0x539 PF: > { %s686_s10 = sand.u32 1, %s1112_s18   ;;  %p1490_p3 = scmp.ne.s32.totalorder %s1482_s29, 0 }
 0x53a   : > { %p1491_p5 = scmp.ge.s32.totalorder %s1132_s23, 2  ;;  %s687_s16 = scalar_lea.sflag [#allocation5], %s686_s10 }
 0x53c   : > { %p880_p9 = pnand %p1491_p5, %p1490_p3 }
 0x53e   : > { %1107 = dma.done.wait (!%p880_p9), %s687_s16, 128  }
 0x53f   : > { %1109 = vsyncadd (!%p880_p9), %s687_s16, 4294967168  ;;  %s22_s23 = sadd.s32 1, %s1132_s23   ;;  %s1492_s18 = smov %s1116_s19 }
 0x540   : > { %p19_p11 = scmp.ge.s32.totalorder %s22_s23, 4   ;;  %s1493_s19 = smov %s1120_s20 }
 0x541   : > { %s1494_s20 = smov %s1318_s6  ;;  %s1495_s21 = smov %s1128_s22 }
 0x542   : > { %s1496_s22 = smov %s1498_s12  ;;  %21 = sbr.rel (!%p19_p11) target bundleno = 7 (0x7), region = 97 }
 0x549   :  { %692 = vsyncpa [#allocation4], 1 }
 0x54a   :  { %694 = vsyncpa [#allocation4 + $0x1], 1 }
 0x54b   :  { %695 = vsyncpa [#allocation7], 1 }
 0x54c   :  { %696 = vsyncpa [#allocation5], 1 }
 0x54d   :  { %698 = vsyncpa [#allocation5 + $0x1], 1 }

</bundles_post_ra>
